<compile_context>
chip_gen: v5e
topology: v5e:2x2
jax: 0.10.0
libtpu: 0.0.40
codegen_flags: <defaults>
</compile_context>

<pallas_src>
import functools

import jax
import jax.numpy as jnp
from jax import lax
from jax.experimental import pallas as pl
from jax.experimental.pallas import tpu as pltpu


def _round_up(x, m):
    return (x + m - 1) // m * m


def _double_conv_relu_kernel(masks_ref, x_ref, w1_ref, b1_ref, w2_ref, b2_ref,
                             o_ref, col_ref, *, shifts, cin_p, cout_p):
    """One grid step: nb batch images folded onto the lane (spatial) axis.

    masks_ref: (9, L)              per-tap validity masks (padding=1), L = nb*H*W
    x_ref    : (cin_p, L)          input activations, channel-major, lane-dense
    w1_ref   : (cout_p, 9*cin_p)   column layout: col = (kh*3+kw)*cin_p + ci
    b1_ref   : (cout_p, 1)
    w2_ref   : (cout_p, 9*cout_p)
    b2_ref   : (cout_p, 1)
    o_ref    : (cout_p, L)
    col_ref  : (9*max(cin_p, cout_p), L) f32 scratch for the im2col column
    """
    L = x_ref.shape[1]

    # Load the precomputed masks once per grid step (reused by BOTH convs).
    masks = [masks_ref[t:t + 1, :] for t in range(9)]            # 9 x (1, L)

    def conv3x3_relu(act, w_ref, b_ref, cp):
        # Build the (9*cp, L) im2col column with tap offsets t*cp that are
        # multiples of 8 (sublane tile): per-tap lane roll (XLU) + mask (VPU)
        # streamed straight into tile-aligned scratch — no concat relayouts.
        for t in range(9):
            d = shifts[t]
            shifted = act if d == 0 else pltpu.roll(act, (-d) % L, axis=1)
            col_ref[t * cp:(t + 1) * cp, :] = shifted * masks[t]
        # One lane-dense MXU matmul per conv: (cout_p, 9*cp) @ (9*cp, L),
        # f32 operands / f32 accumulation.
        acc = jnp.dot(w_ref[...], col_ref[0:9 * cp, :],
                      preferred_element_type=jnp.float32)
        return jnp.maximum(acc + b_ref[...], 0.0)

    y1 = conv3x3_relu(x_ref[...], w1_ref, b1_ref, cin_p)          # (cout_p, L)
    y2 = conv3x3_relu(y1, w2_ref, b2_ref, cout_p)                 # (cout_p, L)
    o_ref[...] = y2.astype(o_ref.dtype)


def double_conv_and_relu(x_nchw, w1_oihw, b1, w2_oihw, b2, *, batch_block=1):
    """Forward pass of DoubleConvAndReLU.  Input/output NCHW like PyTorch."""
    N, Cin, H, W = x_nchw.shape
    Cout = w1_oihw.shape[0]
    HW = H * W
    # nb images share one grid step (their pixels are folded onto the lane
    # axis).  Default 1 keeps >=2 parallel grid steps at N=2 (v7x dual TC);
    # set batch_block=N on v5e/v6e to fold everything into one step.
    nb = batch_block if (batch_block and N % batch_block == 0) else 1
    L = nb * HW   # lane width per grid step; H*W=256 keeps this a x128 multiple

    # Channel padding to the f32 sublane tile (8) keeps every per-tap scratch
    # write tile-aligned; padded channels carry zeros end-to-end.
    cin_p = _round_up(Cin, 8)
    cout_p = _round_up(Cout, 8)

    # Channel-major, flattened-spatial layout: (C, N*H*W).  Lane axis is nb*HW
    # per grid step (wide MXU N-dim, unmasked stores); the wrapper transposes
    # are tiny layout plumbing handled by XLA.
    x_cm = jnp.transpose(x_nchw, (1, 0, 2, 3)).reshape(Cin, N * HW)
    x_cm = jnp.pad(x_cm, ((0, cin_p - Cin), (0, 0)))

    # Weights in tap-major column layout col = (kh*3+kw)*C_p + ci, zero-padded
    # so padded scratch rows / padded output channels contribute exactly 0.
    def pack_w(w, ci, ci_p):
        wt = jnp.transpose(w, (0, 2, 3, 1))                      # (Cout,3,3,ci)
        wt = jnp.pad(wt, ((0, cout_p - Cout), (0, 0), (0, 0), (0, ci_p - ci)))
        return wt.reshape(cout_p, 9 * ci_p)

    w1_mat = pack_w(w1_oihw, Cin, cin_p)
    w2_mat = pack_w(w2_oihw, Cout, cout_p)
    b1_col = jnp.pad(b1, (0, cout_p - Cout)).reshape(cout_p, 1)
    b2_col = jnp.pad(b2, (0, cout_p - Cout)).reshape(cout_p, 1)

    # Host-precomputed per-tap validity masks (this IS the padding=1 zero
    # border), tiled over the nb images folded onto the lane axis.  Roll
    # wrap-around across image/block boundaries is always masked.
    hh = jnp.arange(HW, dtype=jnp.int32) // W
    ww = jnp.arange(HW, dtype=jnp.int32) % W
    mask_rows, shifts = [], []
    for kh in range(3):
        for kw in range(3):
            dh, dw = kh - 1, kw - 1
            valid = ((hh + dh >= 0) & (hh + dh < H) &
                     (ww + dw >= 0) & (ww + dw < W)).astype(jnp.float32)
            mask_rows.append(jnp.tile(valid, nb))
            shifts.append(dh * W + dw)
    masks = jnp.stack(mask_rows)                                  # (9, L)

    kernel = functools.partial(_double_conv_relu_kernel,
                               shifts=tuple(shifts),
                               cin_p=cin_p, cout_p=cout_p)

    flops = 2 * N * HW * 9 * (cin_p * cout_p + cout_p * cout_p)
    bytes_accessed = 4 * (masks.size + x_cm.size + w1_mat.size + b1_col.size
                          + w2_mat.size + b2_col.size + cout_p * N * HW)

    out_cm = pl.pallas_call(
        kernel,
        out_shape=jax.ShapeDtypeStruct((cout_p, N * HW), x_nchw.dtype),
        grid_spec=pltpu.PrefetchScalarGridSpec(
            num_scalar_prefetch=0,
            grid=(N // nb,),
            in_specs=[
                pl.BlockSpec((9, L), lambda n: (0, 0)),            # masks (resident)
                pl.BlockSpec((cin_p, L), lambda n: (0, n)),        # x slab
                pl.BlockSpec((cout_p, 9 * cin_p), lambda n: (0, 0)),
                pl.BlockSpec((cout_p, 1), lambda n: (0, 0)),
                pl.BlockSpec((cout_p, 9 * cout_p), lambda n: (0, 0)),
                pl.BlockSpec((cout_p, 1), lambda n: (0, 0)),
            ],
            out_specs=pl.BlockSpec((cout_p, L), lambda n: (0, n)),
            scratch_shapes=[
                pltpu.VMEM((9 * max(cin_p, cout_p), L), jnp.float32)],
        ),
        compiler_params=pltpu.CompilerParams(
            dimension_semantics=("parallel",)),
        cost_estimate=pl.CostEstimate(flops=flops, transcendentals=0,
                                      bytes_accessed=bytes_accessed),
    )(masks, x_cm, w1_mat, b1_col, w2_mat, b2_col)

    # (cout_p, N*HW) -> (N, Cout, H, W): tiny layout plumbing back to NCHW.
    out = out_cm.reshape(cout_p, N, H, W)[:Cout]
    return jnp.transpose(out, (1, 0, 2, 3))
    # TODO(synk): for production UNet sizes (e.g. 256x256, C=64) add spatial
    # (H) tiling with a 1-row halo; the (9*C, HW_tile) im2col column is the
    # VMEM hog, so size the tile for v7x's 64 MiB VMEM and set
    # vmem_limit_bytes (roughly 2x larger tiles are affordable on v5e/v6e).


def _reference(x_nchw, w1, b1, w2, b2):
    """Pure-JAX reference (lax.conv, f32) for correctness checking."""
    dn = lax.conv_dimension_numbers(x_nchw.shape, w1.shape,
                                    ("NCHW", "OIHW", "NCHW"))
    y = lax.conv_general_dilated(x_nchw, w1, (1, 1), ((1, 1), (1, 1)),
                                 dimension_numbers=dn)
    y = jnp.maximum(y + b1[None, :, None, None], 0.0)
    y = lax.conv_general_dilated(y, w2, (1, 1), ((1, 1), (1, 1)),
                                 dimension_numbers=dn)
    return jnp.maximum(y + b2[None, :, None, None], 0.0)


if __name__ == "__main__":
    # Small, deterministic config consistent with the module:
    # in_channels=4, out_channels=8, conv_kernel_size=(3,3), padding=1
    N, Cin, Cout, H, W = 2, 4, 8, 16, 16

    key = jax.random.PRNGKey(0)
    kx, kw1, kb1, kw2, kb2 = jax.random.split(key, 5)
    x = jax.random.normal(kx, (N, Cin, H, W), dtype=jnp.float32)
    w1 = jax.random.normal(kw1, (Cout, Cin, 3, 3), dtype=jnp.float32) * 0.1
    b1 = jax.random.normal(kb1, (Cout,), dtype=jnp.float32) * 0.1
    w2 = jax.random.normal(kw2, (Cout, Cout, 3, 3), dtype=jnp.float32) * 0.1
    b2 = jax.random.normal(kb2, (Cout,), dtype=jnp.float32) * 0.1

    out = double_conv_and_relu(x, w1, b1, w2, b2)
    out = jax.block_until_ready(out)

    ref = jax.block_until_ready(_reference(x, w1, b1, w2, b2))
    assert out.shape == (N, Cout, H, W)
    # f32 operands / f32 MXU accumulation: agreement is typically ~1e-6 level;
    # tolerance left with margin for MXU pass-precision differences.
    assert jnp.allclose(out, ref, atol=1e-2, rtol=1e-2), \
        float(jnp.max(jnp.abs(out - ref)))

    print("KERNEL_OK")
</pallas_src>

<mosaic_0001>
module attributes {stable_mosaic.version = 11 : i64} {
  func.func @_double_conv_relu_kernel(%arg0: i32, %arg1: memref<9x256xf32, #tpu.memory_space<vmem>>, %arg2: memref<8x256xf32, #tpu.memory_space<vmem>>, %arg3: memref<8x72xf32, #tpu.memory_space<vmem>>, %arg4: memref<8x1xf32, #tpu.memory_space<vmem>>, %arg5: memref<8x72xf32, #tpu.memory_space<vmem>>, %arg6: memref<8x1xf32, #tpu.memory_space<vmem>>, %arg7: memref<8x256xf32, #tpu.memory_space<vmem>>, %arg8: memref<72x256xf32, #tpu.memory_space<vmem>>) attributes {dimension_semantics = [#tpu.dimension_semantics<parallel>], iteration_bounds = array<i64: 2>, scalar_prefetch = 0 : i64, scratch_operands = 1 : i64, tpu.core_type = #tpu.core_type<tc>, window_params = [{pipeline_mode = #tpu.pipeline_mode<synchronous>, transform_indices = @transform_0, window_bounds = array<i64: 9, 256>}, {transform_indices = @transform_1, window_bounds = array<i64: 8, 256>}, {pipeline_mode = #tpu.pipeline_mode<synchronous>, transform_indices = @transform_2, window_bounds = array<i64: 8, 72>}, {pipeline_mode = #tpu.pipeline_mode<synchronous>, transform_indices = @transform_3, window_bounds = array<i64: 8, 1>}, {pipeline_mode = #tpu.pipeline_mode<synchronous>, transform_indices = @transform_4, window_bounds = array<i64: 8, 72>}, {pipeline_mode = #tpu.pipeline_mode<synchronous>, transform_indices = @transform_5, window_bounds = array<i64: 8, 1>}, {transform_indices = @transform_6, window_bounds = array<i64: 8, 256>}]} {
    %c0 = arith.constant 0 : index
    %c0_0 = arith.constant 0 : index
    %0 = vector.load %arg1[%c0, %c0_0] : memref<9x256xf32, #tpu.memory_space<vmem>>, vector<1x256xf32>
    %c1 = arith.constant 1 : index
    %c0_1 = arith.constant 0 : index
    %1 = vector.load %arg1[%c1, %c0_1] : memref<9x256xf32, #tpu.memory_space<vmem>>, vector<1x256xf32>
    %c2 = arith.constant 2 : index
    %c0_2 = arith.constant 0 : index
    %2 = vector.load %arg1[%c2, %c0_2] : memref<9x256xf32, #tpu.memory_space<vmem>>, vector<1x256xf32>
    %c3 = arith.constant 3 : index
    %c0_3 = arith.constant 0 : index
    %3 = vector.load %arg1[%c3, %c0_3] : memref<9x256xf32, #tpu.memory_space<vmem>>, vector<1x256xf32>
    %c4 = arith.constant 4 : index
    %c0_4 = arith.constant 0 : index
    %4 = vector.load %arg1[%c4, %c0_4] : memref<9x256xf32, #tpu.memory_space<vmem>>, vector<1x256xf32>
    %c5 = arith.constant 5 : index
    %c0_5 = arith.constant 0 : index
    %5 = vector.load %arg1[%c5, %c0_5] : memref<9x256xf32, #tpu.memory_space<vmem>>, vector<1x256xf32>
    %c6 = arith.constant 6 : index
    %c0_6 = arith.constant 0 : index
    %6 = vector.load %arg1[%c6, %c0_6] : memref<9x256xf32, #tpu.memory_space<vmem>>, vector<1x256xf32>
    %c7 = arith.constant 7 : index
    %c0_7 = arith.constant 0 : index
    %7 = vector.load %arg1[%c7, %c0_7] : memref<9x256xf32, #tpu.memory_space<vmem>>, vector<1x256xf32>
    %c8 = arith.constant 8 : index
    %c0_8 = arith.constant 0 : index
    %8 = vector.load %arg1[%c8, %c0_8] : memref<9x256xf32, #tpu.memory_space<vmem>>, vector<1x256xf32>
    %c0_9 = arith.constant 0 : index
    %c0_10 = arith.constant 0 : index
    %9 = vector.load %arg2[%c0_9, %c0_10] : memref<8x256xf32, #tpu.memory_space<vmem>>, vector<8x256xf32>
    %c17_i32 = arith.constant 17 : i32
    %10 = tpu.dynamic_rotate %9 by %c17_i32 dim 1 : vector<8x256xf32>, i32 -> vector<8x256xf32>
    %11 = vector.broadcast %0 : vector<1x256xf32> to vector<8x256xf32>
    %12 = arith.mulf %10, %11 : vector<8x256xf32>
    %c0_11 = arith.constant 0 : index
    %c0_12 = arith.constant 0 : index
    %13 = vector.load %arg8[%c0_11, %c0_12] : memref<72x256xf32, #tpu.memory_space<vmem>>, vector<8x256xf32>
    tpu.vector_store %arg8[%c0_11, %c0_12], %12 {strides = array<i32>} : memref<72x256xf32, #tpu.memory_space<vmem>>, vector<8x256xf32>,
    %c16_i32 = arith.constant 16 : i32
    %14 = tpu.dynamic_rotate %9 by %c16_i32 dim 1 : vector<8x256xf32>, i32 -> vector<8x256xf32>
    %15 = vector.broadcast %1 : vector<1x256xf32> to vector<8x256xf32>
    %16 = arith.mulf %14, %15 : vector<8x256xf32>
    %c8_13 = arith.constant 8 : index
    %c0_14 = arith.constant 0 : index
    %17 = vector.load %arg8[%c8_13, %c0_14] : memref<72x256xf32, #tpu.memory_space<vmem>>, vector<8x256xf32>
    tpu.vector_store %arg8[%c8_13, %c0_14], %16 {strides = array<i32>} : memref<72x256xf32, #tpu.memory_space<vmem>>, vector<8x256xf32>,
    %c15_i32 = arith.constant 15 : i32
    %18 = tpu.dynamic_rotate %9 by %c15_i32 dim 1 : vector<8x256xf32>, i32 -> vector<8x256xf32>
    %19 = vector.broadcast %2 : vector<1x256xf32> to vector<8x256xf32>
    %20 = arith.mulf %18, %19 : vector<8x256xf32>
    %c16 = arith.constant 16 : index
    %c0_15 = arith.constant 0 : index
    %21 = vector.load %arg8[%c16, %c0_15] : memref<72x256xf32, #tpu.memory_space<vmem>>, vector<8x256xf32>
    tpu.vector_store %arg8[%c16, %c0_15], %20 {strides = array<i32>} : memref<72x256xf32, #tpu.memory_space<vmem>>, vector<8x256xf32>,
    %c1_i32 = arith.constant 1 : i32
    %22 = tpu.dynamic_rotate %9 by %c1_i32 dim 1 : vector<8x256xf32>, i32 -> vector<8x256xf32>
    %23 = vector.broadcast %3 : vector<1x256xf32> to vector<8x256xf32>
    %24 = arith.mulf %22, %23 : vector<8x256xf32>
    %c24 = arith.constant 24 : index
    %c0_16 = arith.constant 0 : index
    %25 = vector.load %arg8[%c24, %c0_16] : memref<72x256xf32, #tpu.memory_space<vmem>>, vector<8x256xf32>
    tpu.vector_store %arg8[%c24, %c0_16], %24 {strides = array<i32>} : memref<72x256xf32, #tpu.memory_space<vmem>>, vector<8x256xf32>,
    %26 = vector.broadcast %4 : vector<1x256xf32> to vector<8x256xf32>
    %27 = arith.mulf %9, %26 : vector<8x256xf32>
    %c32 = arith.constant 32 : index
    %c0_17 = arith.constant 0 : index
    %28 = vector.load %arg8[%c32, %c0_17] : memref<72x256xf32, #tpu.memory_space<vmem>>, vector<8x256xf32>
    tpu.vector_store %arg8[%c32, %c0_17], %27 {strides = array<i32>} : memref<72x256xf32, #tpu.memory_space<vmem>>, vector<8x256xf32>,
    %c255_i32 = arith.constant 255 : i32
    %29 = tpu.dynamic_rotate %9 by %c255_i32 dim 1 : vector<8x256xf32>, i32 -> vector<8x256xf32>
    %30 = vector.broadcast %5 : vector<1x256xf32> to vector<8x256xf32>
    %31 = arith.mulf %29, %30 : vector<8x256xf32>
    %c40 = arith.constant 40 : index
    %c0_18 = arith.constant 0 : index
    %32 = vector.load %arg8[%c40, %c0_18] : memref<72x256xf32, #tpu.memory_space<vmem>>, vector<8x256xf32>
    tpu.vector_store %arg8[%c40, %c0_18], %31 {strides = array<i32>} : memref<72x256xf32, #tpu.memory_space<vmem>>, vector<8x256xf32>,
    %c241_i32 = arith.constant 241 : i32
    %33 = tpu.dynamic_rotate %9 by %c241_i32 dim 1 : vector<8x256xf32>, i32 -> vector<8x256xf32>
    %34 = vector.broadcast %6 : vector<1x256xf32> to vector<8x256xf32>
    %35 = arith.mulf %33, %34 : vector<8x256xf32>
    %c48 = arith.constant 48 : index
    %c0_19 = arith.constant 0 : index
    %36 = vector.load %arg8[%c48, %c0_19] : memref<72x256xf32, #tpu.memory_space<vmem>>, vector<8x256xf32>
    tpu.vector_store %arg8[%c48, %c0_19], %35 {strides = array<i32>} : memref<72x256xf32, #tpu.memory_space<vmem>>, vector<8x256xf32>,
    %c240_i32 = arith.constant 240 : i32
    %37 = tpu.dynamic_rotate %9 by %c240_i32 dim 1 : vector<8x256xf32>, i32 -> vector<8x256xf32>
    %38 = vector.broadcast %7 : vector<1x256xf32> to vector<8x256xf32>
    %39 = arith.mulf %37, %38 : vector<8x256xf32>
    %c56 = arith.constant 56 : index
    %c0_20 = arith.constant 0 : index
    %40 = vector.load %arg8[%c56, %c0_20] : memref<72x256xf32, #tpu.memory_space<vmem>>, vector<8x256xf32>
    tpu.vector_store %arg8[%c56, %c0_20], %39 {strides = array<i32>} : memref<72x256xf32, #tpu.memory_space<vmem>>, vector<8x256xf32>,
    %c239_i32 = arith.constant 239 : i32
    %41 = tpu.dynamic_rotate %9 by %c239_i32 dim 1 : vector<8x256xf32>, i32 -> vector<8x256xf32>
    %42 = vector.broadcast %8 : vector<1x256xf32> to vector<8x256xf32>
    %43 = arith.mulf %41, %42 : vector<8x256xf32>
    %c64 = arith.constant 64 : index
    %c0_21 = arith.constant 0 : index
    %44 = vector.load %arg8[%c64, %c0_21] : memref<72x256xf32, #tpu.memory_space<vmem>>, vector<8x256xf32>
    tpu.vector_store %arg8[%c64, %c0_21], %43 {strides = array<i32>} : memref<72x256xf32, #tpu.memory_space<vmem>>, vector<8x256xf32>,
    %c0_22 = arith.constant 0 : index
    %c0_23 = arith.constant 0 : index
    %45 = vector.load %arg3[%c0_22, %c0_23] : memref<8x72xf32, #tpu.memory_space<vmem>>, vector<8x72xf32>
    %c0_24 = arith.constant 0 : index
    %c0_25 = arith.constant 0 : index
    %46 = vector.load %arg8[%c0_24, %c0_25] : memref<72x256xf32, #tpu.memory_space<vmem>>, vector<72x256xf32>
    %cst = arith.constant dense<0.000000e+00> : vector<8x256xf32>
    %47 = tpu.matmul %45, %46, %cst {dimension_numbers = #tpu.dot_dimension_numbers<[1], [0], [0], [1], [0, 0, 1, 1], [], []>} : vector<8x72xf32>, vector<72x256xf32>, vector<8x256xf32> -> vector<8x256xf32>
    %c0_26 = arith.constant 0 : index
    %c0_27 = arith.constant 0 : index
    %48 = vector.load %arg4[%c0_26, %c0_27] : memref<8x1xf32, #tpu.memory_space<vmem>>, vector<8x1xf32>
    %49 = vector.broadcast %48 : vector<8x1xf32> to vector<8x256xf32>
    %50 = arith.addf %47, %49 : vector<8x256xf32>
    %cst_28 = arith.constant 0.000000e+00 : f32
    %51 = vector.broadcast %cst_28 : f32 to vector<8x256xf32>
    %52 = arith.maximumf %50, %51 : vector<8x256xf32>
    %c17_i32_29 = arith.constant 17 : i32
    %53 = tpu.dynamic_rotate %52 by %c17_i32_29 dim 1 : vector<8x256xf32>, i32 -> vector<8x256xf32>
    %54 = vector.broadcast %0 : vector<1x256xf32> to vector<8x256xf32>
    %55 = arith.mulf %53, %54 : vector<8x256xf32>
    %c0_30 = arith.constant 0 : index
    %c0_31 = arith.constant 0 : index
    %56 = vector.load %arg8[%c0_30, %c0_31] : memref<72x256xf32, #tpu.memory_space<vmem>>, vector<8x256xf32>
    tpu.vector_store %arg8[%c0_30, %c0_31], %55 {strides = array<i32>} : memref<72x256xf32, #tpu.memory_space<vmem>>, vector<8x256xf32>,
    %c16_i32_32 = arith.constant 16 : i32
    %57 = tpu.dynamic_rotate %52 by %c16_i32_32 dim 1 : vector<8x256xf32>, i32 -> vector<8x256xf32>
    %58 = vector.broadcast %1 : vector<1x256xf32> to vector<8x256xf32>
    %59 = arith.mulf %57, %58 : vector<8x256xf32>
    %c8_33 = arith.constant 8 : index
    %c0_34 = arith.constant 0 : index
    %60 = vector.load %arg8[%c8_33, %c0_34] : memref<72x256xf32, #tpu.memory_space<vmem>>, vector<8x256xf32>
    tpu.vector_store %arg8[%c8_33, %c0_34], %59 {strides = array<i32>} : memref<72x256xf32, #tpu.memory_space<vmem>>, vector<8x256xf32>,
    %c15_i32_35 = arith.constant 15 : i32
    %61 = tpu.dynamic_rotate %52 by %c15_i32_35 dim 1 : vector<8x256xf32>, i32 -> vector<8x256xf32>
    %62 = vector.broadcast %2 : vector<1x256xf32> to vector<8x256xf32>
    %63 = arith.mulf %61, %62 : vector<8x256xf32>
    %c16_36 = arith.constant 16 : index
    %c0_37 = arith.constant 0 : index
    %64 = vector.load %arg8[%c16_36, %c0_37] : memref<72x256xf32, #tpu.memory_space<vmem>>, vector<8x256xf32>
    tpu.vector_store %arg8[%c16_36, %c0_37], %63 {strides = array<i32>} : memref<72x256xf32, #tpu.memory_space<vmem>>, vector<8x256xf32>,
    %c1_i32_38 = arith.constant 1 : i32
    %65 = tpu.dynamic_rotate %52 by %c1_i32_38 dim 1 : vector<8x256xf32>, i32 -> vector<8x256xf32>
    %66 = vector.broadcast %3 : vector<1x256xf32> to vector<8x256xf32>
    %67 = arith.mulf %65, %66 : vector<8x256xf32>
    %c24_39 = arith.constant 24 : index
    %c0_40 = arith.constant 0 : index
    %68 = vector.load %arg8[%c24_39, %c0_40] : memref<72x256xf32, #tpu.memory_space<vmem>>, vector<8x256xf32>
    tpu.vector_store %arg8[%c24_39, %c0_40], %67 {strides = array<i32>} : memref<72x256xf32, #tpu.memory_space<vmem>>, vector<8x256xf32>,
    %69 = vector.broadcast %4 : vector<1x256xf32> to vector<8x256xf32>
    %70 = arith.mulf %52, %69 : vector<8x256xf32>
    %c32_41 = arith.constant 32 : index
    %c0_42 = arith.constant 0 : index
    %71 = vector.load %arg8[%c32_41, %c0_42] : memref<72x256xf32, #tpu.memory_space<vmem>>, vector<8x256xf32>
    tpu.vector_store %arg8[%c32_41, %c0_42], %70 {strides = array<i32>} : memref<72x256xf32, #tpu.memory_space<vmem>>, vector<8x256xf32>,
    %c255_i32_43 = arith.constant 255 : i32
    %72 = tpu.dynamic_rotate %52 by %c255_i32_43 dim 1 : vector<8x256xf32>, i32 -> vector<8x256xf32>
    %73 = vector.broadcast %5 : vector<1x256xf32> to vector<8x256xf32>
    %74 = arith.mulf %72, %73 : vector<8x256xf32>
    %c40_44 = arith.constant 40 : index
    %c0_45 = arith.constant 0 : index
    %75 = vector.load %arg8[%c40_44, %c0_45] : memref<72x256xf32, #tpu.memory_space<vmem>>, vector<8x256xf32>
    tpu.vector_store %arg8[%c40_44, %c0_45], %74 {strides = array<i32>} : memref<72x256xf32, #tpu.memory_space<vmem>>, vector<8x256xf32>,
    %c241_i32_46 = arith.constant 241 : i32
    %76 = tpu.dynamic_rotate %52 by %c241_i32_46 dim 1 : vector<8x256xf32>, i32 -> vector<8x256xf32>
    %77 = vector.broadcast %6 : vector<1x256xf32> to vector<8x256xf32>
    %78 = arith.mulf %76, %77 : vector<8x256xf32>
    %c48_47 = arith.constant 48 : index
    %c0_48 = arith.constant 0 : index
    %79 = vector.load %arg8[%c48_47, %c0_48] : memref<72x256xf32, #tpu.memory_space<vmem>>, vector<8x256xf32>
    tpu.vector_store %arg8[%c48_47, %c0_48], %78 {strides = array<i32>} : memref<72x256xf32, #tpu.memory_space<vmem>>, vector<8x256xf32>,
    %c240_i32_49 = arith.constant 240 : i32
    %80 = tpu.dynamic_rotate %52 by %c240_i32_49 dim 1 : vector<8x256xf32>, i32 -> vector<8x256xf32>
    %81 = vector.broadcast %7 : vector<1x256xf32> to vector<8x256xf32>
    %82 = arith.mulf %80, %81 : vector<8x256xf32>
    %c56_50 = arith.constant 56 : index
    %c0_51 = arith.constant 0 : index
    %83 = vector.load %arg8[%c56_50, %c0_51] : memref<72x256xf32, #tpu.memory_space<vmem>>, vector<8x256xf32>
    tpu.vector_store %arg8[%c56_50, %c0_51], %82 {strides = array<i32>} : memref<72x256xf32, #tpu.memory_space<vmem>>, vector<8x256xf32>,
    %c239_i32_52 = arith.constant 239 : i32
    %84 = tpu.dynamic_rotate %52 by %c239_i32_52 dim 1 : vector<8x256xf32>, i32 -> vector<8x256xf32>
    %85 = vector.broadcast %8 : vector<1x256xf32> to vector<8x256xf32>
    %86 = arith.mulf %84, %85 : vector<8x256xf32>
    %c64_53 = arith.constant 64 : index
    %c0_54 = arith.constant 0 : index
    %87 = vector.load %arg8[%c64_53, %c0_54] : memref<72x256xf32, #tpu.memory_space<vmem>>, vector<8x256xf32>
    tpu.vector_store %arg8[%c64_53, %c0_54], %86 {strides = array<i32>} : memref<72x256xf32, #tpu.memory_space<vmem>>, vector<8x256xf32>,
    %c0_55 = arith.constant 0 : index
    %c0_56 = arith.constant 0 : index
    %88 = vector.load %arg5[%c0_55, %c0_56] : memref<8x72xf32, #tpu.memory_space<vmem>>, vector<8x72xf32>
    %c0_57 = arith.constant 0 : index
    %c0_58 = arith.constant 0 : index
    %89 = vector.load %arg8[%c0_57, %c0_58] : memref<72x256xf32, #tpu.memory_space<vmem>>, vector<72x256xf32>
    %cst_59 = arith.constant dense<0.000000e+00> : vector<8x256xf32>
    %90 = tpu.matmul %88, %89, %cst_59 {dimension_numbers = #tpu.dot_dimension_numbers<[1], [0], [0], [1], [0, 0, 1, 1], [], []>} : vector<8x72xf32>, vector<72x256xf32>, vector<8x256xf32> -> vector<8x256xf32>
    %c0_60 = arith.constant 0 : index
    %c0_61 = arith.constant 0 : index
    %91 = vector.load %arg6[%c0_60, %c0_61] : memref<8x1xf32, #tpu.memory_space<vmem>>, vector<8x1xf32>
    %92 = vector.broadcast %91 : vector<8x1xf32> to vector<8x256xf32>
    %93 = arith.addf %90, %92 : vector<8x256xf32>
    %cst_62 = arith.constant 0.000000e+00 : f32
    %94 = vector.broadcast %cst_62 : f32 to vector<8x256xf32>
    %95 = arith.maximumf %93, %94 : vector<8x256xf32>
    %c0_63 = arith.constant 0 : index
    %c0_64 = arith.constant 0 : index
    %96 = vector.load %arg7[%c0_63, %c0_64] : memref<8x256xf32, #tpu.memory_space<vmem>>, vector<8x256xf32>
    tpu.vector_store %arg7[%c0_63, %c0_64], %95 {strides = array<i32>} : memref<8x256xf32, #tpu.memory_space<vmem>>, vector<8x256xf32>,
    return
  }
  func.func @transform_0(%arg0: i32) -> (i32, i32) {
    %c0_i32 = arith.constant 0 : i32
    %c0_i32_0 = arith.constant 0 : i32
    %c0_i32_1 = arith.constant 0 : i32
    return %c0_i32, %c0_i32_0 : i32, i32
  }
  func.func @transform_1(%arg0: i32) -> (i32, i32) {
    %c0_i32 = arith.constant 0 : i32
    %c0_i32_0 = arith.constant 0 : i32
    return %c0_i32, %arg0 : i32, i32
  }
  func.func @transform_2(%arg0: i32) -> (i32, i32) {
    %c0_i32 = arith.constant 0 : i32
    %c0_i32_0 = arith.constant 0 : i32
    %c0_i32_1 = arith.constant 0 : i32
    return %c0_i32, %c0_i32_0 : i32, i32
  }
  func.func @transform_3(%arg0: i32) -> (i32, i32) {
    %c0_i32 = arith.constant 0 : i32
    %c0_i32_0 = arith.constant 0 : i32
    %c0_i32_1 = arith.constant 0 : i32
    return %c0_i32, %c0_i32_0 : i32, i32
  }
  func.func @transform_4(%arg0: i32) -> (i32, i32) {
    %c0_i32 = arith.constant 0 : i32
    %c0_i32_0 = arith.constant 0 : i32
    %c0_i32_1 = arith.constant 0 : i32
    return %c0_i32, %c0_i32_0 : i32, i32
  }
  func.func @transform_5(%arg0: i32) -> (i32, i32) {
    %c0_i32 = arith.constant 0 : i32
    %c0_i32_0 = arith.constant 0 : i32
    %c0_i32_1 = arith.constant 0 : i32
    return %c0_i32, %c0_i32_0 : i32, i32
  }
  func.func @transform_6(%arg0: i32) -> (i32, i32) {
    %c0_i32 = arith.constant 0 : i32
    %c0_i32_0 = arith.constant 0 : i32
    return %c0_i32, %arg0 : i32, i32
  }
}

</mosaic_0001>

<bundles_post_ra>
// kernel: tpu_custom_call.1
= control target key start
LH: loop header
LB: loop body
LE: loop exit
PB: predicated region body
PF: predicated region fallthrough
CT: control target
= control target key end

     0   :  { %11 = vsyncpa [#allocation4], 0  ;;  %s1436_s0 = inlined_call_operand.hbm [shape: f32[9,256], index: 0, kind: input, shape index: {}]   ;;  %s1437_s1 = inlined_call_operand.hbm [shape: f32[8,512], index: 1, kind: input, shape index: {}]   ;;  %s1438_s2 = inlined_call_operand.vmem [shape: f32[8,72], index: 2, kind: input, shape index: {}]   ;;  %s1439_s3 = inlined_call_operand.vmem [shape: f32[8,1], index: 3, kind: input, shape index: {}]   ;;  %s1440_s4 = inlined_call_operand.vmem [shape: f32[8,72], index: 4, kind: input, shape index: {}]   ;;  %s1441_s5 = inlined_call_operand.vmem [shape: f32[8,1], index: 5, kind: input, shape index: {}]   ;;  %s1442_s6 = inlined_call_operand.hbm [shape: f32[8,512], index: 6, kind: output, shape index: {}]  }
   0x1   :  { %12 = vsyncpa [#allocation7], 0 }
   0x2   :  { %14 = vsyncpa [#allocation7 + $0x1], 0 }
   0x3   :  { %15 = vsyncpa [#allocation5], 0 }
   0x4   :  { %17 = vsyncpa [#allocation5 + $0x1], 0  ;;  %s1044_s21 = smov 0   ;;  %s1046_s22 = smov 0  }
   0x5   :  { %s1048_s23 = smov 0   ;;  %s1050_s24 = smov 0  }
   0x6 LB: > { %s196_s27 = sshll.u32 %s1436_s0, 4  ;;  %s1068_s28 = sadd.s32 4294967295, %s995_s24   ;;  %s995_s24 = sphi %s1050_s24, %s1452_s24   ;;  %s991_s23 = sphi %s1048_s23, %s1451_s23   ;;  %s987_s22 = sphi %s1046_s22, %s1450_s22   ;;  %s983_s21 = sphi %s1044_s21, %s1449_s21   ;;  %s197_s27 = int_to_ptr.hbm [resolvable:$true] %s196_s27 }
   0x7   : > { %p774_p0 = scmp.ge.s32.totalorder %s995_s24, 1  ;;  %p65_p1 = scmp.eq.s32.totalorder %s1068_s28, 0 }
   0x8   : > { %p185_p2 = scmp.lt.s32.totalorder %s995_s24, 3  ;;  %s997_s30 = smov [#allocation3]  }
   0x9   : > { %s198_s7 = sshll.u32 %s997_s30, 4  ;;  %s998_s8 = smov 256   ;;  %s199_s7 = int_to_ptr.vmem [resolvable:$true] %s198_s7 }
   0xa   : > { %p1073_p3 = pnand %p774_p0, %p185_p2  ;;  %s999_s9 = smov 16  }
   0xb   : > { %s773_s10 = sadd.s32 4294967294, %s995_s24   ;;  %s1084_s11 = sadd.s32 1, %s995_s24  }
   0xc   : > { %p803_p4 = pneg %p1073_p3  ;;  %s51_s12 = sadd.s32 1, %s991_s23 }
   0xd   : > { %s48_s13 = ssub.s32 %s995_s24, %s1084_s11  ;;  %p58_p7 = scmp.ne.s32.totalorder %s991_s23, %s987_s22 }
   0xe   : > { %p804_p6 = pnand %p803_p4, %p65_p1  ;;  %p49_p8 = scmp.eq.s32.totalorder %s48_s13, 0 }
   0xf   : > { %p59_p9 = scmp.eq.s32.totalorder %s995_s24, 0  ;;  %p64_p10 = scmp.ne.s32.totalorder %s987_s22, %s983_s21 }
  0x10   : > { %806 = dma.hbm_to_vmem [thread:$0]  (!%p804_p6), %s197_s27, 512, %s199_s7, [#allocation4], %s998_s8, %s998_s8, %s999_s9  }
  0x11   : > { %p172_p11 = scmp.eq.s32.totalorder %s1068_s28, 1  ;;  %p1100_p12 = por %p65_p1, %p64_p10 }
  0x12   : > { %s1096_s14 = scalar_select %p49_p8, %s991_s23, %s51_s12  }
  0x13   : > { %p1104_p13 = por %p172_p11, %p58_p7  ;;  %p178_p0 = scmp.eq.s32.totalorder %s773_s10, 1 }
  0x14   : > { %p60_p2 = por %p59_p9, %p58_p7  ;;  %s224_s17 = sand.u32 1, %s991_s23  }
  0x15   : > { %p1109_p4 = por %p178_p0, %p64_p10  ;;  %p816_p6 = scmp.lt.s32.totalorder %s995_s24, 2 }
  0x16   : > { %s777_s19 = sshll.u32 %s224_s17, 4  ;;  %s793_s20 = sshll.u32 %s995_s24, 4 }
  0x17   : > { %s233_s27 = scalar_lea.hbm %s1437_s1, %s793_s20  ;;  %s228_s7 = scalar_lea.vmem [#allocation6], %s777_s19 }
  0x18   : > { %s235_s30 = sshll.u32 %s233_s27, 4  ;;  %s237_s8 = sshll.u32 %s228_s7, 4  ;;  %s236_s30 = int_to_ptr.hbm [resolvable:$true] %s235_s30  ;;  %s238_s8 = int_to_ptr.vmem [resolvable:$true] %s237_s8 }
  0x19   : > { %p1118_p8 = pnand %p816_p6, %p60_p2  ;;  %s225_s10 = scalar_lea.sflag [#allocation7], %s224_s17 }
  0x1a   : > { %s895_s12 = sshra.s32 %s236_s30, 4  ;;  %s902_s19 = scalar_lea.hbm %s1437_s1, 32  ;;  %s896_s12 = int_to_ptr.hbm [resolvable:$true] %s895_s12 }
  0x1b   : > { %s897_s13 = scalar_lea.hbm %s896_s12, 16  ;;  %p899_p9 = pneg %p1118_p8 }
  0x1c   : > { %p898_p7 = scmp.ne.s32.totalorder %s896_s12, %s897_s13  ;;  %p903_p0 = scmp.lt.s32.totalorder %s896_s12, %s1437_s1 }
  0x1d   : > { %p904_p2 = scmp.lt.s32.totalorder %s902_s19, %s897_s13 }
  0x1e   : > { %p900_p10 = pnand %p899_p9, %p898_p7 }
  0x1f   : > { %p905_p6 = por %p904_p2, %p903_p0 }
  0x20   : > { %p901_p11 = pneg %p900_p10 }
  0x22   : > { %p906_p5 = pnand %p905_p6, %p901_p11 }
  0x24   : > { %909 = shalt.err (!%p906_p5)
}
  0x25   : > { %810 = dma.hbm_to_vmem [thread:$0]  (!%p1118_p8), %s236_s30, 256, %s238_s8, %s225_s10  }
  0x26   : > { %246 = sbr.rel (%p1073_p3) target bundleno = 631 (0x277), region = 44 }
  0x2b   : > { %970 = dma.done.wait (%p65_p1), [#allocation4], 512  }
  0x2c   : > { %972 = vsyncadd (%p65_p1), [#allocation4], 4294966784  ;;  %s1139_s17 = sand.u32 1, %s987_s22  }
  0x2d   : > { %s782_s7 = sshll.u32 %s1139_s17, 4  ;;  %s254_s12 = scalar_lea.sflag [#allocation7], %s1139_s17 }
  0x2e   : > { %s257_s30 = scalar_lea.vmem [#allocation6], %s782_s7 }
  0x2f   : > { %974 = dma.done.wait (%p1100_p12), %s254_s12, 256  }
  0x30   : > { %976 = vsyncadd (%p1100_p12), %s254_s12, 4294967040  ;;  %v1149_v0 = vld [vmem:[%s257_s30] sm:$0xff]  ;;  %s1000_s29 = smov 112   ;;  %s1001_s8 = smov 111   ;;  %v1157_v1 = vld [vmem:[%s257_s30 + $0x8] sm:$0xff]  ;;  %v312_v3 = vlaneseq  ;;  %v1008_v39 = vmov 0  }
  0x31   : > { %415 = vrot.lane.b32.xlu1 %v1149_v0, %s1000_s29  ;;  %431 = vrot.lane.b32.xlu0 %v1149_v0, %s1001_s8  ;;  %s1002_s9 = smov 113   ;;  %s1003_s15 = smov 127   ;;  %v1187_v7 = vld [vmem:[#allocation3 + $0x10] ss:$8 sm:$0x3]  ;;  %v466_v38 = vld [vmem:[%s1439_s3] sm:$0xff] }
  0x32   : > { %399 = vrot.lane.b32.xlu2 %v1149_v0, %s1002_s9  ;;  %s1004_s10 = smov 1   ;;  %s1005_s13 = smov 15   ;;  %v1185_v6 = vand.u32 127, %v312_v3  ;;  %v1189_v9 = vld [vmem:[#allocation3 + $0x7] ss:$8 sm:$0x3]  ;;  %863 = vset.pattern.permute.xlu1 %v1008_v39 }
  0x33   : > { %s1006_s20 = smov 16   ;;  %s1007_s25 = smov 17   ;;  %v439_v10 = vperm.slane %v1187_v7, 0  ;;  %v440_v11 = vperm.slane %v1187_v7, 1  ;;  %v423_v15 = vperm.slane %v1189_v9, 0  ;;  %v424_v16 = vperm.slane %v1189_v9, 1  ;;  %864 = vset.pattern.permute.xlu0 %v1008_v39 }
  0x34   : > { %vm419_vm0 = vcmp.lt.s32.totalorder %v1185_v6, 112  ;;  %vm435_vm1 = vcmp.lt.s32.totalorder %v1185_v6, 111  ;;  %v1195_v12 = vld [vmem:[#allocation3 + $0x6] ss:$8 sm:$0x3]  ;;  %vm403_vm2 = vcmp.lt.s32.totalorder %v1185_v6, 113 }
  0x35   : > { %v407_v23 = vperm.slane %v1195_v12, 0  ;;  %v408_v24 = vperm.slane %v1195_v12, 1  ;;  %v1214_v25 = vld [vmem:[#allocation3 + $0x5] ss:$8 sm:$0x3]  ;;  %vm387_vm3 = vcmp.lt.s32.totalorder %v1185_v6, 127 }
  0x36   : > { %v1220_v28 = vld [vmem:[#allocation3 + $0x4] ss:$8 sm:$0x3]  ;;  %v391_v32 = vperm.slane %v1214_v25, 0  ;;  %v392_v33 = vperm.slane %v1214_v25, 1  ;;  %vm362_vm4 = vcmp.lt.s32.totalorder %v1185_v6, 1 }
  0x37   : > { %v375_v36 = vperm.slane %v1220_v28, 0  ;;  %v376_v37 = vperm.slane %v1220_v28, 1  ;;  %v1252_v48 = vld [vmem:[#allocation3 + $0x3] ss:$8 sm:$0x3]  ;;  %vm346_vm5 = vcmp.lt.s32.totalorder %v1185_v6, 15 }
  0x38   : > { %v1254_v49 = vld [vmem:[#allocation3 + $0x2] ss:$8 sm:$0x3]  ;;  %v366_v50 = vperm.slane %v1252_v48, 0  ;;  %v367_v51 = vperm.slane %v1252_v48, 1  ;;  %vm330_vm6 = vcmp.lt.s32.totalorder %v1185_v6, 16 }
  0x39   : > { %417 = vrot.lane.b32.xlu1 %v1157_v1, %s1000_s29  ;;  %433 = vrot.lane.b32.xlu0 %v1157_v1, %s1001_s8  ;;  %v379_v46 = vmul.f32 %v375_v36, %v1149_v0  ;;  %v380_v47 = vmul.f32 %v376_v37, %v1157_v1  ;;  %v350_v53 = vperm.slane %v1254_v49, 0  ;;  %v351_v54 = vperm.slane %v1254_v49, 1 }
  0x3a   : > { %401 = vrot.lane.b32.xlu2 %v1157_v1, %s1002_s9  ;;  %vm314_vm7 = vcmp.lt.s32.totalorder %v1185_v6, 17  ;;  %vm472_vm8 = vcmask 588800   ;;  %v602_v6 = vld [vmem:[%s1440_s4] sm:$0xff] }
  0x41   : > { %385 = vrot.lane.b32.xlu1 %v1157_v1, %s1003_s15  ;;  %383 = vrot.lane.b32.xlu0 %v1149_v0, %s1003_s15 }
  0x42   : > { %358 = vrot.lane.b32.xlu2 %v1149_v0, %s1004_s10 }
  0x49   : > { %342 = vrot.lane.b32.xlu1 %v1149_v0, %s1005_s13  ;;  %360 = vrot.lane.b32.xlu0 %v1157_v1, %s1004_s10 }
  0x4a   : > { %344 = vrot.lane.b32.xlu2 %v1157_v1, %s1005_s13 }
  0x51   : > { %328 = vrot.lane.b32.xlu1 %v1157_v1, %s1006_s20  ;;  %326 = vrot.lane.b32.xlu0 %v1149_v0, %s1006_s20 }
  0x52   : > { %308 = vrot.lane.b32.xlu2 %v1149_v0, %s1007_s25 }
  0x59   : > { %310 = vrot.lane.b32.xlu0 %v1157_v1, %s1007_s25  ;;  %469 = vperm.xlu1 %863, %v466_v38   ;;  %v1278_v1 = vld [vmem:[#allocation3 + $0x1] ss:$8 sm:$0x3] }
  0x5a   : > { %v335_v3 = vperm.slane %v1278_v1, 1 }
  0x8c   : > { %v400_v2 = vpop.permute.xlu2 %399 }
  0x94   : > { %v402_v8 = vpop.permute.xlu2 %401 }
  0x95   : > { %v404_v26 = vsel %vm403_vm2, %v400_v2, %v402_v8  ;;  %v405_v27 = vsel %vm403_vm2, %v402_v8, %v400_v2  ;;  %v334_v2 = vperm.slane %v1278_v1, 0 }
  0x96   : > { %v411_v34 = vmul.f32 %v407_v23, %v404_v26  ;;  %v412_v35 = vmul.f32 %v408_v24, %v405_v27 }
  0x9c   : > { %v359_v31 = vpop.permute.xlu2 %358 }
  0xa3   : > { %v416_v4 = vpop.permute.xlu1 %415  ;;  %v432_v5 = vpop.permute.xlu0 %431 }
  0xa4   : > { %v345_v52 = vpop.permute.xlu2 %344 }
  0xab   : > { %v418_v13 = vpop.permute.xlu1 %417  ;;  %v434_v14 = vpop.permute.xlu0 %433 }
  0xac   : > { %v420_v17 = vsel %vm419_vm0, %v416_v4, %v418_v13  ;;  %v421_v18 = vsel %vm419_vm0, %v418_v13, %v416_v4  ;;  %v436_v19 = vsel %vm435_vm1, %v432_v5, %v434_v14  ;;  %v437_v20 = vsel %vm435_vm1, %v434_v14, %v432_v5 }
  0xad   : > { %v443_v21 = vmul.f32 %v439_v10, %v436_v19  ;;  %v444_v22 = vmul.f32 %v440_v11, %v437_v20  ;;  %v427_v29 = vmul.f32 %v423_v15, %v420_v17  ;;  %v428_v30 = vmul.f32 %v424_v16, %v421_v18  ;;  %v1291_v18 = vld [vmem:[#allocation3] ss:$8 sm:$0x3]  ;;  %v309_v19 = vpop.permute.xlu2 %308 }
  0xae   : > { %v318_v20 = vperm.slane %v1291_v18, 0 }
  0xaf   : > { %483 = vmatpush.msra.mxu0 %v443_v21  ;;  %503 = vmatpush.msra.mxu1 %v444_v22  ;;  %v319_v21 = vperm.slane %v1291_v18, 1 }
  0xb1   : > { %484 = vmatpush.msra.mxu0 %v427_v29  ;;  %504 = vmatpush.msra.mxu1 %v428_v30 }
  0xb3   : > { %v386_v40 = vpop.permute.xlu1 %385  ;;  %v384_v41 = vpop.permute.xlu0 %383  ;;  %485 = vmatpush.msra.mxu0 %v411_v34  ;;  %505 = vmatpush.msra.mxu1 %v412_v35 }
  0xb4   : > { %v388_v42 = vsel %vm387_vm3, %v384_v41, %v386_v40  ;;  %v389_v43 = vsel %vm387_vm3, %v386_v40, %v384_v41 }
  0xb5   : > { %v395_v44 = vmul.f32 %v391_v32, %v388_v42  ;;  %v396_v45 = vmul.f32 %v392_v33, %v389_v43 }
  0xb7   : > { %486 = vmatpush.msra.mxu0 %v395_v44  ;;  %506 = vmatpush.msra.mxu1 %v396_v45 }
  0xb9   : > { %487 = vmatpush.msra.mxu0 %v379_v46  ;;  %507 = vmatpush.msra.mxu1 %v380_v47 }
  0xbb   : > { %v343_v55 = vpop.permute.xlu1 %342  ;;  %v361_v56 = vpop.permute.xlu0 %360 }
  0xbc   : > { %v363_v57 = vsel %vm362_vm4, %v359_v31, %v361_v56  ;;  %v364_v58 = vsel %vm362_vm4, %v361_v56, %v359_v31  ;;  %v347_v59 = vsel %vm346_vm5, %v343_v55, %v345_v52  ;;  %v348_v60 = vsel %vm346_vm5, %v345_v52, %v343_v55  ;;  %v447_v31 = vld [vmem:[%s1438_s2] sm:$0xff] }
  0xbd   : > { %v370_v61 = vmul.f32 %v366_v50, %v364_v58  ;;  %v371_v62 = vmul.f32 %v367_v51, %v363_v57  ;;  %v354_v63 = vmul.f32 %v350_v53, %v348_v60  ;;  %v355_v0 = vmul.f32 %v351_v54, %v347_v59 }
  0xbf   : > { %488 = vmatpush.msra.mxu0 %v370_v61  ;;  %508 = vmatpush.msra.mxu1 %v371_v62  ;;  %v621_v62 = vld [vmem:[%s1441_s5] sm:$0xff] }
  0xc1   : > { %489 = vmatpush.msra.mxu0 %v354_v63  ;;  %509 = vmatpush.msra.mxu1 %v355_v0 }
  0xc3   : > { %v329_v4 = vpop.permute.xlu1 %328  ;;  %v327_v5 = vpop.permute.xlu0 %326 }
  0xc4   : > { %v331_v8 = vsel %vm330_vm6, %v327_v5, %v329_v4  ;;  %v332_v13 = vsel %vm330_vm6, %v329_v4, %v327_v5 }
  0xc5   : > { %v338_v14 = vmul.f32 %v334_v2, %v332_v13  ;;  %v339_v17 = vmul.f32 %v335_v3, %v331_v8 }
  0xc7   : > { %490 = vmatpush.msra.mxu0 %v338_v14  ;;  %510 = vmatpush.msra.mxu1 %v339_v17 }
  0xcb   : > { %v311_v22 = vpop.permute.xlu0 %310  ;;  %v470_v34 = vpop.permute.xlu1 %469 }
  0xcc   : > { %v315_v26 = vsel %vm314_vm7, %v309_v19, %v311_v22  ;;  %v316_v27 = vsel %vm314_vm7, %v311_v22, %v309_v19 }
  0xcd   : > { %v322_v29 = vmul.f32 %v318_v20, %v316_v27  ;;  %v323_v30 = vmul.f32 %v319_v21, %v315_v26 }
  0xcf   : > { %491 = vmatpush.msra.mxu0 %v322_v29  ;;  %511 = vmatpush.msra.mxu1 %v323_v30 }
  0xd0   : > { %784 = vmatmul.msk.f32.vlgmr.msra.gmra.mxu0 %vm472_vm8, %v447_v31  ;;  %785 = vmatmul.msk.f32.vlgmr.msra.gmra.mxu1 %vm472_vm8, %v447_v31 }
 0x14d   : > { %v493_v35 = vpop.f32.mrf.mxu0  ;;  %v513_v38 = vpop.f32.mrf.mxu1 }
 0x14e   : > { %v494_v39 = vadd.f32 %v493_v35, %v470_v34  ;;  %v514_v40 = vadd.f32 %v513_v38, %v470_v34 }
 0x150   : > { %v516_v41 = vmax.f32 %v494_v39, 0.0  ;;  %v517_v42 = vmax.f32 %v514_v40, 0.0 }
 0x152   : > { %594 = vrot.lane.b32.xlu0 %v517_v42, %s1001_s8  ;;  %582 = vrot.lane.b32.xlu1 %v516_v41, %s1000_s29  ;;  %v558_v14 = vmul.f32 %v516_v41, %v375_v36  ;;  %v559_v17 = vmul.f32 %v517_v42, %v376_v37 }
 0x153   : > { %592 = vrot.lane.b32.xlu2 %v516_v41, %s1001_s8 }
 0x15a   : > { %572 = vrot.lane.b32.xlu0 %v516_v41, %s1002_s9  ;;  %574 = vrot.lane.b32.xlu1 %v517_v42, %s1002_s9 }
 0x15b   : > { %584 = vrot.lane.b32.xlu2 %v517_v42, %s1000_s29 }
 0x162   : > { %564 = vrot.lane.b32.xlu0 %v517_v42, %s1003_s15  ;;  %548 = vrot.lane.b32.xlu1 %v516_v41, %s1004_s10 }
 0x163   : > { %562 = vrot.lane.b32.xlu2 %v516_v41, %s1003_s15  ;;  %s794_s15 = sshll.u32 %s1068_s28, 4  ;;  %s675_s28 = scalar_lea.sflag [#allocation5], %s1139_s17 }
 0x16a   : > { %538 = vrot.lane.b32.xlu0 %v516_v41, %s1005_s13  ;;  %540 = vrot.lane.b32.xlu1 %v517_v42, %s1005_s13 }
 0x16b   : > { %550 = vrot.lane.b32.xlu2 %v517_v42, %s1004_s10 }
 0x172   : > { %530 = vrot.lane.b32.xlu0 %v517_v42, %s1006_s20  ;;  %518 = vrot.lane.b32.xlu1 %v516_v41, %s1007_s25 }
 0x173   : > { %528 = vrot.lane.b32.xlu2 %v516_v41, %s1006_s20  ;;  %s686_s20 = scalar_lea.hbm %s1442_s6, %s794_s15 }
 0x174   : > { %s690_s26 = sshll.u32 %s686_s20, 4  ;;  %s691_s26 = int_to_ptr.hbm [resolvable:$true] %s690_s26 }
 0x175   : > { %s939_s27 = sshra.s32 %s691_s26, 4  ;;  %s940_s27 = int_to_ptr.hbm [resolvable:$true] %s939_s27 }
 0x176   : > { %s941_s12 = scalar_lea.hbm %s940_s27, 16  ;;  %p946_p12 = scmp.lt.s32.totalorder %s940_s27, %s1442_s6 }
 0x177   : > { %p942_p1 = scmp.ne.s32.totalorder %s940_s27, %s941_s12 }
 0x179   : > { %p943_p3 = pnand %p942_p1, %p1104_p13 }
 0x17a   : > { %624 = vperm.xlu0 %864, %v621_v62  }
 0x17b   : > { %520 = vrot.lane.b32.xlu2 %v517_v42, %s1007_s25  ;;  %s286_s25 = scalar_lea.vmem [#allocation8], %s782_s7  ;;  %p944_p5 = pneg %p943_p3 }
 0x17c   : > { %s688_s19 = sshll.u32 %s286_s25, 4  ;;  %s945_s7 = scalar_lea.hbm %s1442_s6, 32  ;;  %s689_s19 = int_to_ptr.vmem [resolvable:$true] %s688_s19 }
 0x17d   : > { %p947_p8 = scmp.lt.s32.totalorder %s945_s7, %s941_s12 }
 0x17f   : > { %p948_p7 = por %p947_p8, %p946_p12 }
 0x181   : > { %p949_p9 = pnand %p948_p7, %p944_p5 }
 0x1ad   : > { %v593_v43 = vpop.permute.xlu2 %592 }
 0x1b5   : > { %v585_v44 = vpop.permute.xlu2 %584 }
 0x1bd   : > { %v563_v47 = vpop.permute.xlu2 %562 }
 0x1c4   : > { %v595_v45 = vpop.permute.xlu0 %594  ;;  %v583_v46 = vpop.permute.xlu1 %582 }
 0x1c5   : > { %v586_v52 = vsel %vm419_vm0, %v583_v46, %v585_v44  ;;  %v587_v55 = vsel %vm419_vm0, %v585_v44, %v583_v46  ;;  %v596_v56 = vsel %vm435_vm1, %v593_v43, %v595_v45  ;;  %v597_v57 = vsel %vm435_vm1, %v595_v45, %v593_v43 }
 0x1c6   : > { %v598_v58 = vmul.f32 %v596_v56, %v439_v10  ;;  %v599_v59 = vmul.f32 %v597_v57, %v440_v11  ;;  %v588_v60 = vmul.f32 %v586_v52, %v423_v15  ;;  %v589_v61 = vmul.f32 %v587_v55, %v424_v16  ;;  %v551_v15 = vpop.permute.xlu2 %550 }
 0x1c8   : > { %637 = vmatpush.msra.mxu2 %v598_v58  ;;  %657 = vmatpush.msra.mxu3 %v599_v59 }
 0x1ca   : > { %638 = vmatpush.msra.mxu2 %v588_v60  ;;  %658 = vmatpush.msra.mxu3 %v589_v61 }
 0x1cc   : > { %v573_v63 = vpop.permute.xlu0 %572  ;;  %v575_v0 = vpop.permute.xlu1 %574 }
 0x1cd   : > { %v576_v7 = vsel %vm403_vm2, %v573_v63, %v575_v0  ;;  %v577_v10 = vsel %vm403_vm2, %v575_v0, %v573_v63 }
 0x1ce   : > { %v578_v11 = vmul.f32 %v576_v7, %v407_v23  ;;  %v579_v9 = vmul.f32 %v577_v10, %v408_v24  ;;  %v529_v19 = vpop.permute.xlu2 %528 }
 0x1d0   : > { %639 = vmatpush.msra.mxu2 %v578_v11  ;;  %659 = vmatpush.msra.mxu3 %v579_v9 }
 0x1d4   : > { %v565_v16 = vpop.permute.xlu0 %564  ;;  %v549_v4 = vpop.permute.xlu1 %548 }
 0x1d5   : > { %v566_v5 = vsel %vm387_vm3, %v563_v47, %v565_v16  ;;  %v567_v8 = vsel %vm387_vm3, %v565_v16, %v563_v47  ;;  %v552_v12 = vsel %vm362_vm4, %v549_v4, %v551_v15  ;;  %v553_v24 = vsel %vm362_vm4, %v551_v15, %v549_v4 }
 0x1d6   : > { %v568_v13 = vmul.f32 %v566_v5, %v391_v32  ;;  %v569_v23 = vmul.f32 %v567_v8, %v392_v33  ;;  %v554_v25 = vmul.f32 %v553_v24, %v366_v50  ;;  %v555_v32 = vmul.f32 %v552_v12, %v367_v51  ;;  %v521_v48 = vpop.permute.xlu2 %520 }
 0x1d8   : > { %640 = vmatpush.msra.mxu2 %v568_v13  ;;  %660 = vmatpush.msra.mxu3 %v569_v23 }
 0x1da   : > { %641 = vmatpush.msra.mxu2 %v558_v14  ;;  %661 = vmatpush.msra.mxu3 %v559_v17 }
 0x1dc   : > { %v539_v33 = vpop.permute.xlu0 %538  ;;  %v541_v22 = vpop.permute.xlu1 %540  ;;  %642 = vmatpush.msra.mxu2 %v554_v25  ;;  %662 = vmatpush.msra.mxu3 %v555_v32 }
 0x1dd   : > { %v542_v26 = vsel %vm346_vm5, %v539_v33, %v541_v22  ;;  %v543_v28 = vsel %vm346_vm5, %v541_v22, %v539_v33 }
 0x1de   : > { %v544_v36 = vmul.f32 %v543_v28, %v350_v53  ;;  %v545_v37 = vmul.f32 %v542_v26, %v351_v54 }
 0x1e0   : > { %643 = vmatpush.msra.mxu2 %v544_v36  ;;  %663 = vmatpush.msra.mxu3 %v545_v37 }
 0x1e4   : > { %v531_v50 = vpop.permute.xlu0 %530  ;;  %v519_v51 = vpop.permute.xlu1 %518 }
 0x1e5   : > { %v532_v27 = vsel %vm330_vm6, %v529_v19, %v531_v50  ;;  %v533_v29 = vsel %vm330_vm6, %v531_v50, %v529_v19  ;;  %v522_v30 = vsel %vm314_vm7, %v519_v51, %v521_v48  ;;  %v523_v53 = vsel %vm314_vm7, %v521_v48, %v519_v51 }
 0x1e6   : > { %v534_v49 = vmul.f32 %v533_v29, %v334_v2  ;;  %v535_v54 = vmul.f32 %v532_v27, %v335_v3  ;;  %v524_v31 = vmul.f32 %v523_v53, %v318_v20  ;;  %v525_v34 = vmul.f32 %v522_v30, %v319_v21 }
 0x1e8   : > { %644 = vmatpush.msra.mxu2 %v534_v49  ;;  %664 = vmatpush.msra.mxu3 %v535_v54 }
 0x1ea   : > { %645 = vmatpush.msra.mxu2 %v524_v31  ;;  %665 = vmatpush.msra.mxu3 %v525_v34 }
 0x1eb   : > { %786 = vmatmul.msk.f32.vlgmr.msra.gmra.mxu2 %vm472_vm8, %v602_v6  ;;  %787 = vmatmul.msk.f32.vlgmr.msra.gmra.mxu3 %vm472_vm8, %v602_v6 }
 0x1ec   : > { %v625_v1 = vpop.permute.xlu0 %624 }
 0x26e   : > { %v647_v2 = vpop.f32.mrf.mxu2  ;;  %v667_v3 = vpop.f32.mrf.mxu3 }
 0x26f   : > { %v648_v18 = vadd.f32 %v647_v2, %v625_v1  ;;  %v668_v20 = vadd.f32 %v667_v3, %v625_v1 }
 0x271   : > { %v670_v21 = vmax.f32 %v648_v18, 0.0  ;;  %v671_v35 = vmax.f32 %v668_v20, 0.0 }
 0x273   : > { %672 = vst [vmem:[%s286_s25] sm:$0xff] %v670_v21 }
 0x274   : > { %673 = vst [vmem:[%s286_s25 + $0x8] sm:$0xff] %v671_v35 }
 0x275   : > { %952 = shalt.err (!%p949_p9)
}
 0x276   : > { %801 = dma.vmem_to_hbm [thread:$0]  (%p1104_p13), %s689_s19, 256, %s691_s26, %s675_s28  }
 0x277 PF: > { %s702_s17 = sand.u32 1, %s983_s21   ;;  %p1448_p10 = scmp.ge.s32.totalorder %s995_s24, 2 }
 0x278   : > { %s703_s15 = scalar_lea.sflag [#allocation5], %s702_s17 }
 0x279   : > { %p812_p11 = pnand %p1448_p10, %p1109_p4 }
 0x27b   : > { %p813_p0 = pneg %p812_p11 }
 0x27d   : > { %978 = dma.done.wait (%p813_p0), %s703_s15, 256  }
 0x27e   : > { %980 = vsyncadd (%p813_p0), %s703_s15, 4294967040  ;;  %p20_p2 = scmp.ge.s32.totalorder %s1084_s11, 4   ;;  %s1449_s21 = smov %s987_s22 }
 0x27f   : > { %s1450_s22 = smov %s991_s23  ;;  %s1451_s23 = smov %s1096_s14 }
 0x280   : > { %s1452_s24 = smov %s1084_s11  ;;  %22 = sbr.rel (!%p20_p2) target bundleno = 6 (0x6), region = 102 }
 0x285   :  { %709 = vsyncpa [#allocation4], 1 }
 0x286   :  { %711 = vsyncpa [#allocation4 + $0x1], 1 }
 0x287   :  { %712 = vsyncpa [#allocation7], 1 }
 0x288   :  { %714 = vsyncpa [#allocation7 + $0x1], 1 }
 0x289   :  { %715 = vsyncpa [#allocation5], 1 }
 0x28a   :  { %717 = vsyncpa [#allocation5 + $0x1], 1 }

</bundles_post_ra>
